<compile_context>
chip_gen: v6e
topology: v6e:2x2x1
jax: 0.10.0
libtpu: 0.0.40
codegen_flags: <defaults>
</compile_context>

<pallas_src>
import jax
import jax.numpy as jnp
from jax.experimental import pallas as pl
from jax.experimental.pallas import tpu as pltpu

_LANES = 128
_SUBLANES = 8


def _word2vec_kernel(s_ref, x_ref, y_ref, o_ref):
    # s_ref : (4,) SMEM   [S_ww, S_wb, S_bw, S_bb]   (scalar prefetch)
    # x_ref : (tile_rows, 128) VMEM  input word indices (as f32)
    # y_ref : (tile_rows, 128) VMEM  target word indices (as f32)
    # o_ref : (tile_rows, 128) VMEM  sigmoid(similarity), lane-dense
    x = x_ref[...]
    y = y_ref[...]
    sim = (x * y) * s_ref[0] + x * s_ref[1] + y * s_ref[2] + s_ref[3]
    o_ref[...] = jax.nn.sigmoid(sim)


def _word2vec_forward(input_words, target_words, w_in, b_in, w_tg, b_tg,
                      *, max_tile_rows=1024):
    """input_words/target_words: (B,) or (B, 1) float32. Returns (B,) float32.

    w_*: (1, D) pre-transposed Linear(1, D) weights; b_*: (1, D) biases.
    """
    B = input_words.shape[0]

    # Fold the D-reduction into four weight-only scalars (O(D) work, once).
    scalars = jnp.stack([
        jnp.sum(w_in * w_tg),   # S_ww : coefficient of x*y
        jnp.sum(w_in * b_tg),   # S_wb : coefficient of x
        jnp.sum(b_in * w_tg),   # S_bw : coefficient of y
        jnp.sum(b_in * b_tg),   # S_bb : constant
    ]).astype(jnp.float32)

    # Lane-dense batch layout: B elements -> (rows, 128).
    rows = -(-B // _LANES)                       # ceil(B / 128)
    if rows <= max_tile_rows:
        # Small batch: one whole-array block (exempt from the (8,128) rule).
        grid = 1
        tile_rows = rows
    else:
        # Large batch: balanced tiles of ~max_tile_rows rows, sublane-aligned.
        rows8 = -(-rows // _SUBLANES) * _SUBLANES
        grid = -(-rows8 // max_tile_rows)
        if grid > 1:
            grid = -(-grid // 2) * 2             # even grid -> both v7x TCs
        tile_rows = -(-rows8 // (grid * _SUBLANES)) * _SUBLANES
        rows = grid * tile_rows
    padded = rows * _LANES
    pad = padded - B

    x = input_words.reshape(-1).astype(jnp.float32)
    y = target_words.reshape(-1).astype(jnp.float32)
    if pad:
        x = jnp.pad(x, (0, pad))
        y = jnp.pad(y, (0, pad))
    x = x.reshape(rows, _LANES)
    y = y.reshape(rows, _LANES)

    out = pl.pallas_call(
        _word2vec_kernel,
        out_shape=jax.ShapeDtypeStruct((rows, _LANES), jnp.float32),
        grid_spec=pltpu.PrefetchScalarGridSpec(
            num_scalar_prefetch=1,
            grid=(grid,),
            in_specs=[
                pl.BlockSpec((tile_rows, _LANES), lambda i, s: (i, 0)),
                pl.BlockSpec((tile_rows, _LANES), lambda i, s: (i, 0)),
            ],
            out_specs=pl.BlockSpec((tile_rows, _LANES), lambda i, s: (i, 0)),
        ),
        compiler_params=pltpu.CompilerParams(
            dimension_semantics=("parallel",)),
        cost_estimate=pl.CostEstimate(
            flops=7 * padded,
            transcendentals=padded,
            bytes_accessed=3 * padded * 4),
    )(scalars, x, y)

    out = out.reshape(-1)
    return out if pad == 0 else out[:B]


word2vec_forward = jax.jit(_word2vec_forward, static_argnames=("max_tile_rows",))


def _reference(input_words, target_words, w_in, b_in, w_tg, b_tg):
    x = input_words.reshape(-1, 1)
    y = target_words.reshape(-1, 1)
    ie = x * w_in + b_in
    te = y * w_tg + b_tg
    return jax.nn.sigmoid(jnp.sum(ie * te, axis=1))


if __name__ == "__main__":
    D = 32  # embedding_dim
    key = jax.random.PRNGKey(0)
    ks = jax.random.split(key, 10)

    # Linear(1, D) parameters: weight (D, 1) stored pre-transposed as (1, D).
    w_in = jax.random.uniform(ks[0], (1, D), jnp.float32, -1.0, 1.0)
    b_in = jax.random.uniform(ks[1], (1, D), jnp.float32, -1.0, 1.0)
    w_tg = jax.random.uniform(ks[2], (1, D), jnp.float32, -1.0, 1.0)
    b_tg = jax.random.uniform(ks[3], (1, D), jnp.float32, -1.0, 1.0)

    # Check 1: one DataLoader batch (batch_size=32), (B, 1) like .unsqueeze(1).
    B = 32
    input_words = jnp.floor(
        jax.random.uniform(ks[4], (B, 1), jnp.float32, 0.0, 32.0))
    target_words = jnp.floor(
        jax.random.uniform(ks[5], (B, 1), jnp.float32, 0.0, 32.0))
    out = jax.block_until_ready(
        word2vec_forward(input_words, target_words, w_in, b_in, w_tg, b_tg))
    ref = _reference(input_words, target_words, w_in, b_in, w_tg, b_tg)
    assert out.shape == (B,)
    assert jnp.allclose(out, ref, atol=1e-3, rtol=1e-3), \
        float(jnp.max(jnp.abs(out - ref)))

    # Check 2: lane-aligned batch (no padding, no output slice), grid = 1.
    B2 = 4096
    x2 = jnp.floor(jax.random.uniform(ks[6], (B2,), jnp.float32, 0.0, 32.0))
    y2 = jnp.floor(jax.random.uniform(ks[7], (B2,), jnp.float32, 0.0, 32.0))
    out2 = jax.block_until_ready(
        word2vec_forward(x2, y2, w_in, b_in, w_tg, b_tg))
    ref2 = _reference(x2, y2, w_in, b_in, w_tg, b_tg)
    assert out2.shape == (B2,)
    assert jnp.allclose(out2, ref2, atol=1e-3, rtol=1e-3), \
        float(jnp.max(jnp.abs(out2 - ref2)))

    # Check 3: ragged batch with a multi-step (even) grid, exercising padding,
    # the parallel grid dimension, and balanced-tile selection.
    B3 = 20000
    x3 = jnp.floor(jax.random.uniform(ks[8], (B3,), jnp.float32, 0.0, 32.0))
    y3 = jnp.floor(jax.random.uniform(ks[9], (B3,), jnp.float32, 0.0, 32.0))
    out3 = jax.block_until_ready(
        word2vec_forward(x3, y3, w_in, b_in, w_tg, b_tg, max_tile_rows=64))
    ref3 = _reference(x3, y3, w_in, b_in, w_tg, b_tg)
    assert out3.shape == (B3,)
    assert jnp.allclose(out3, ref3, atol=1e-3, rtol=1e-3), \
        float(jnp.max(jnp.abs(out3 - ref3)))

    print("KERNEL_OK")
</pallas_src>

<mosaic_0001>
module attributes {stable_mosaic.version = 11 : i64} {
  func.func @_word2vec_kernel(%arg0: i32, %arg1: memref<4xf32, #tpu.memory_space<smem>>, %arg2: memref<1x128xf32, #tpu.memory_space<vmem>>, %arg3: memref<1x128xf32, #tpu.memory_space<vmem>>, %arg4: memref<1x128xf32, #tpu.memory_space<vmem>>) attributes {dimension_semantics = [#tpu.dimension_semantics<parallel>], iteration_bounds = array<i64: 1>, scalar_prefetch = 1 : i64, scratch_operands = 0 : i64, tpu.core_type = #tpu.core_type<tc>, window_params = [{transform_indices = @transform_0, window_bounds = array<i64: 1, 128>}, {transform_indices = @transform_1, window_bounds = array<i64: 1, 128>}, {transform_indices = @transform_2, window_bounds = array<i64: 1, 128>}]} {
    %c0 = arith.constant 0 : index
    %c0_0 = arith.constant 0 : index
    %0 = vector.load %arg2[%c0, %c0_0] : memref<1x128xf32, #tpu.memory_space<vmem>>, vector<1x128xf32>
    %c0_1 = arith.constant 0 : index
    %c0_2 = arith.constant 0 : index
    %1 = vector.load %arg3[%c0_1, %c0_2] : memref<1x128xf32, #tpu.memory_space<vmem>>, vector<1x128xf32>
    %2 = arith.mulf %0, %1 : vector<1x128xf32>
    %c0_3 = arith.constant 0 : index
    %3 = memref.load %arg1[%c0_3] : memref<4xf32, #tpu.memory_space<smem>>
    %4 = vector.broadcast %3 : f32 to vector<1x128xf32>
    %5 = arith.mulf %2, %4 : vector<1x128xf32>
    %c1 = arith.constant 1 : index
    %6 = memref.load %arg1[%c1] : memref<4xf32, #tpu.memory_space<smem>>
    %7 = vector.broadcast %6 : f32 to vector<1x128xf32>
    %8 = arith.mulf %0, %7 : vector<1x128xf32>
    %9 = arith.addf %5, %8 : vector<1x128xf32>
    %c2 = arith.constant 2 : index
    %10 = memref.load %arg1[%c2] : memref<4xf32, #tpu.memory_space<smem>>
    %11 = vector.broadcast %10 : f32 to vector<1x128xf32>
    %12 = arith.mulf %1, %11 : vector<1x128xf32>
    %13 = arith.addf %9, %12 : vector<1x128xf32>
    %c3 = arith.constant 3 : index
    %14 = memref.load %arg1[%c3] : memref<4xf32, #tpu.memory_space<smem>>
    %15 = vector.broadcast %14 : f32 to vector<1x128xf32>
    %16 = arith.addf %13, %15 : vector<1x128xf32>
    %17 = arith.negf %16 : vector<1x128xf32>
    %18 = math.exp %17 : vector<1x128xf32>
    %cst = arith.constant 1.000000e+00 : f32
    %19 = vector.broadcast %cst : f32 to vector<1x128xf32>
    %20 = arith.addf %19, %18 : vector<1x128xf32>
    %21 = arith.divf %19, %20 : vector<1x128xf32>
    %c0_4 = arith.constant 0 : index
    %c0_5 = arith.constant 0 : index
    %22 = vector.load %arg4[%c0_4, %c0_5] : memref<1x128xf32, #tpu.memory_space<vmem>>, vector<1x128xf32>
    tpu.vector_store %arg4[%c0_4, %c0_5], %21 {strides = array<i32>} : memref<1x128xf32, #tpu.memory_space<vmem>>, vector<1x128xf32>,
    return
  }
  func.func @transform_0(%arg0: i32, %arg1: memref<4xf32, #tpu.memory_space<smem>>) -> (i32, i32) {
    %c0_i32 = arith.constant 0 : i32
    %c0_i32_0 = arith.constant 0 : i32
    return %arg0, %c0_i32 : i32, i32
  }
  func.func @transform_1(%arg0: i32, %arg1: memref<4xf32, #tpu.memory_space<smem>>) -> (i32, i32) {
    %c0_i32 = arith.constant 0 : i32
    %c0_i32_0 = arith.constant 0 : i32
    return %arg0, %c0_i32 : i32, i32
  }
  func.func @transform_2(%arg0: i32, %arg1: memref<4xf32, #tpu.memory_space<smem>>) -> (i32, i32) {
    %c0_i32 = arith.constant 0 : i32
    %c0_i32_0 = arith.constant 0 : i32
    return %arg0, %c0_i32 : i32, i32
  }
}

</mosaic_0001>

<bundles_post_ra>
// kernel: _word2vec_forward.1
= control target key start
LH: loop header
LB: loop body
LE: loop exit
PB: predicated region body
PF: predicated region fallthrough
CT: control target
= control target key end

     0   :  { %s102_s0 = inlined_call_operand.vmem [shape: f32[4], index: 0, kind: input, shape index: {}]   ;;  %s103_s1 = inlined_call_operand.vmem [shape: f32[1,128], index: 1, kind: input, shape index: {}]   ;;  %s104_s2 = inlined_call_operand.vmem [shape: f32[1,128], index: 2, kind: input, shape index: {}]   ;;  %s105_s3 = inlined_call_operand.vmem [shape: f32[1,128], index: 3, kind: output, shape index: {}]  }
   0x1   :  { %s8_s14 = sshll.u32 %s102_s0, 4  ;;  %s9_s14 = int_to_ptr.vmem [resolvable:$true] %s8_s14 }
   0x2   :  { %s55_s15 = scalar_lea.vmem %s9_s14, 16  ;;  %p60_p1 = scmp.lt.s32.totalorder %s9_s14, %s9_s14 }
   0x3   :  { %p56_p0 = scmp.ne.s32.totalorder %s9_s14, %s55_s15  ;;  %p61_p2 = scmp.lt.s32.totalorder %s55_s15, %s55_s15 }
   0x5   :  { %p62_p3 = por %p61_p2, %p60_p1 }
   0x7   :  { %p63_p4 = pnand %p62_p3, %p56_p0 }
   0x9   :  { %66 = shalt.err (!%p63_p4)  }
   0xa   :  { %s69_s16 = smov [#allocation3]  }
   0xb   :  { %11 = dma.vmem_to_smem %s9_s14, 16, %s69_s16, [#allocation2] }
   0xc   :  { %67 = dma.done.wait [#allocation2], 16 }
   0xd   :  { %68 = vsyncadd [#allocation2], 4294967280 }
   0xe   :  { %13 = sfence }
   0xf   :  { %v18_v0 = vld [vmem:[%s103_s1] sm:$0x1]  ;;  %s21_s0 = sld [smem:[#allocation3]] }
  0x10   :  { %v19_v1 = vld [vmem:[%s104_s2] sm:$0x1]  ;;  %s46_s21 = sld [smem:[#allocation3 + $0x1]] }
  0x11   :  { %s47_s22 = sld [smem:[#allocation3 + $0x2]]  ;;  %v20_v2 = vmul.f32 %v19_v1, %v18_v0 }
  0x12   :  { %s48_s23 = sld [smem:[#allocation3 + $0x3]] }
  0x15   :  { %v22_v3 = vstv %s21_s0 }
  0x16   :  { %v23_v4 = vmul.f32 %v22_v3, %v20_v2  ;;  %v25_v5 = vstv %s46_s21 }
  0x17   :  { %v26_v6 = vmul.f32 %v25_v5, %v18_v0  ;;  %v29_v7 = vstv %s47_s22 }
  0x18   :  { %v30_v8 = vmul.f32 %v29_v7, %v19_v1  ;;  %v33_v10 = vstv %s48_s23 }
  0x19   :  { %v27_v9 = vadd.f32 %v26_v6, %v23_v4 }
  0x1b   :  { %v31_v11 = vadd.f32 %v30_v8, %v27_v9 }
  0x1d   :  { %v34_v12 = vadd.f32 %v33_v10, %v31_v11 }
  0x1f   :  { %v49_v13 = vmul.f32 -1.442695, %v34_v12 }
  0x21   :  { %51 = vpow2.f32 %v49_v13 }
  0x2e   :  { %v52_v14 = vpop.eup %51 }
  0x2f   :  { %v38_v15 = vadd.f32 1.0, %v52_v14 }
  0x31   :  { %53 = vrcp.f32 %v38_v15 }
  0x3e   :  { %v54_v16 = vpop.eup %53 }
  0x3f   :  { %41 = vst [vmem:[%s105_s3] sm:$0x1] %v54_v16 }

</bundles_post_ra>
